<compile_context>
chip_gen: v6e
topology: v6e:2x2x1
jax: 0.10.0
libtpu: 0.0.40
codegen_flags: <defaults>
</compile_context>

<pallas_src>
import jax
import jax.numpy as jnp
from jax import lax
from jax.experimental import pallas as pl
from jax.experimental.pallas import tpu as pltpu


def _numerical_out_kernel(w_ref, b_ref, x_ref, o_ref):
    # w_ref: (F, K)    weight, resident across the whole grid
    # b_ref: (1, F)    bias as a row vector (broadcasts over the tm rows)
    # x_ref: (tm, K)   activation tile for this grid step
    # o_ref: (tm, F)   output tile in native (M, F) layout -> no transpose later
    acc = lax.dot_general(
        x_ref[...], w_ref[...],
        dimension_numbers=(((1,), (1,)), ((), ())),  # contract K on both sides
        preferred_element_type=jnp.float32,          # f32 accumulate + f32 epilogue
    )
    o_ref[...] = (acc + b_ref[...]).astype(o_ref.dtype)


# x tile (tm, K) is lane-padded to tm x 128 f32 in VMEM; 2048 rows -> 1 MiB per
# buffer, x2 for double-buffering, far under the v7x 64 MiB physical / 32 MiB
# scoped VMEM budget (also fine on v5e/v6e's 128 MiB).
_VMEM_SAFE_TM = 2048
_SINGLE_BLOCK_MAX = 1024   # below this the op is pure launch overhead anyway


def _pick_m_tile(M):
    if M <= _SINGLE_BLOCK_MAX:
        # One block: block dim == full array dim is always a legal BlockSpec,
        # and splitting a launch-dominated op only adds per-step overhead.
        return M
    # Large M: biggest VMEM-safe tile that divides M exactly (no masked tail)
    # and leaves >= 2 grid steps so v7x's second TensorCore gets work.
    for t in (2048, 1024, 512):
        if M % t == 0 and M // t >= 2:
            return t
    # Irregular M: fixed 512-row tiles with a Pallas-masked tail block
    # (each output row depends only on its own input row, so the masked /
    # padded tail block is safe).
    return 512


def numerical_out(x, weight, bias):
    """NumericalOut.forward: y = x @ weight.T + bias (nn.Linear semantics).

    x:      (..., d_model)
    weight: (in_features, d_model)
    bias:   (in_features,)
    returns (..., in_features)
    """
    K = x.shape[-1]
    F = weight.shape[0]
    lead = x.shape[:-1]
    M = 1
    for s in lead:
        M *= s

    x2 = x.reshape(M, K)        # free reshape of contiguous leading dims
    b2 = bias.reshape(1, F)     # row vector, broadcasts over the tm rows

    tm = _pick_m_tile(M)
    grid = (pl.cdiv(M, tm),)

    flops = 2 * M * K * F
    bytes_accessed = (x2.size * x2.dtype.itemsize
                      + weight.size * weight.dtype.itemsize
                      + b2.size * b2.dtype.itemsize
                      + M * F * x.dtype.itemsize)

    out = pl.pallas_call(
        _numerical_out_kernel,
        out_shape=jax.ShapeDtypeStruct((M, F), x.dtype),
        grid_spec=pltpu.PrefetchScalarGridSpec(
            num_scalar_prefetch=0,
            grid=grid,
            in_specs=[
                pl.BlockSpec((F, K), lambda i: (0, 0)),    # weight: DMA'd once
                pl.BlockSpec((1, F), lambda i: (0, 0)),    # bias:   DMA'd once
                pl.BlockSpec((tm, K), lambda i: (i, 0)),   # stream x tiles over M
            ],
            out_specs=pl.BlockSpec((tm, F), lambda i: (i, 0)),  # native (M, F)
        ),
        compiler_params=pltpu.CompilerParams(
            dimension_semantics=("parallel",),  # shard M tiles across TCs (v7x)
        ),
        cost_estimate=pl.CostEstimate(
            flops=flops, transcendentals=0, bytes_accessed=bytes_accessed),
    )(weight, b2, x2)

    # Free contiguous reshape only -- no transpose kernel.
    return out.reshape(*lead, F)


if __name__ == "__main__":
    # Config implied by the module: d_model (hidden), in_features (output numerics).
    batch, seq, d_model, in_features = 2, 8, 32, 4

    key = jax.random.PRNGKey(0)
    kx, kw, kb = jax.random.split(key, 3)

    x = jax.random.normal(kx, (batch, seq, d_model), dtype=jnp.float32)
    # Deterministic nn.Linear-shaped parameters.
    bound = 1.0 / (d_model ** 0.5)
    weight = jax.random.uniform(kw, (in_features, d_model),
                                minval=-bound, maxval=bound, dtype=jnp.float32)
    bias = jax.random.uniform(kb, (in_features,),
                              minval=-bound, maxval=bound, dtype=jnp.float32)

    y = numerical_out(x, weight, bias)
    jax.block_until_ready(y)

    # Sanity check against plain-JAX reference.
    y_ref = x @ weight.T + bias
    assert y.shape == (batch, seq, in_features)
    assert jnp.allclose(y, y_ref, atol=1e-5, rtol=1e-5)

    print("KERNEL_OK")
</pallas_src>

<mosaic_0001>
module attributes {stable_mosaic.version = 11 : i64} {
  func.func @_numerical_out_kernel(%arg0: i32, %arg1: memref<4x32xf32, #tpu.memory_space<vmem>>, %arg2: memref<1x4xf32, #tpu.memory_space<vmem>>, %arg3: memref<16x32xf32, #tpu.memory_space<vmem>>, %arg4: memref<16x4xf32, #tpu.memory_space<vmem>>) attributes {dimension_semantics = [#tpu.dimension_semantics<parallel>], iteration_bounds = array<i64: 1>, scalar_prefetch = 0 : i64, scratch_operands = 0 : i64, tpu.core_type = #tpu.core_type<tc>, window_params = [{pipeline_mode = #tpu.pipeline_mode<synchronous>, transform_indices = @transform_0, window_bounds = array<i64: 4, 32>}, {pipeline_mode = #tpu.pipeline_mode<synchronous>, transform_indices = @transform_1, window_bounds = array<i64: 1, 4>}, {transform_indices = @transform_2, window_bounds = array<i64: 16, 32>}, {transform_indices = @transform_3, window_bounds = array<i64: 16, 4>}]} {
    %c0 = arith.constant 0 : index
    %c0_0 = arith.constant 0 : index
    %0 = vector.load %arg3[%c0, %c0_0] : memref<16x32xf32, #tpu.memory_space<vmem>>, vector<16x32xf32>
    %c0_1 = arith.constant 0 : index
    %c0_2 = arith.constant 0 : index
    %1 = vector.load %arg1[%c0_1, %c0_2] : memref<4x32xf32, #tpu.memory_space<vmem>>, vector<4x32xf32>
    %cst = arith.constant dense<0.000000e+00> : vector<16x4xf32>
    %2 = tpu.matmul %0, %1, %cst {dimension_numbers = #tpu.dot_dimension_numbers<[1], [1], [0], [0], [0, 0, 1, 0], [], []>} : vector<16x32xf32>, vector<4x32xf32>, vector<16x4xf32> -> vector<16x4xf32>
    %c0_3 = arith.constant 0 : index
    %c0_4 = arith.constant 0 : index
    %3 = vector.load %arg2[%c0_3, %c0_4] : memref<1x4xf32, #tpu.memory_space<vmem>>, vector<1x4xf32>
    %4 = vector.broadcast %3 : vector<1x4xf32> to vector<16x4xf32>
    %5 = arith.addf %2, %4 : vector<16x4xf32>
    %c0_5 = arith.constant 0 : index
    %c0_6 = arith.constant 0 : index
    %6 = vector.load %arg4[%c0_5, %c0_6] : memref<16x4xf32, #tpu.memory_space<vmem>>, vector<16x4xf32>
    tpu.vector_store %arg4[%c0_5, %c0_6], %5 {strides = array<i32>} : memref<16x4xf32, #tpu.memory_space<vmem>>, vector<16x4xf32>,
    return
  }
  func.func @transform_0(%arg0: i32) -> (i32, i32) {
    %c0_i32 = arith.constant 0 : i32
    %c0_i32_0 = arith.constant 0 : i32
    %c0_i32_1 = arith.constant 0 : i32
    return %c0_i32, %c0_i32_0 : i32, i32
  }
  func.func @transform_1(%arg0: i32) -> (i32, i32) {
    %c0_i32 = arith.constant 0 : i32
    %c0_i32_0 = arith.constant 0 : i32
    %c0_i32_1 = arith.constant 0 : i32
    return %c0_i32, %c0_i32_0 : i32, i32
  }
  func.func @transform_2(%arg0: i32) -> (i32, i32) {
    %c0_i32 = arith.constant 0 : i32
    %c0_i32_0 = arith.constant 0 : i32
    return %arg0, %c0_i32 : i32, i32
  }
  func.func @transform_3(%arg0: i32) -> (i32, i32) {
    %c0_i32 = arith.constant 0 : i32
    %c0_i32_0 = arith.constant 0 : i32
    return %arg0, %c0_i32 : i32, i32
  }
}

</mosaic_0001>

<bundles_post_ra>
// kernel: tpu_custom_call.1
= control target key start
LH: loop header
LB: loop body
LE: loop exit
PB: predicated region body
PF: predicated region fallthrough
CT: control target
= control target key end

     0   :  { %8 = vsyncpa [#allocation3], 0  ;;  %s243_s0 = inlined_call_operand.hbm [shape: f32[4,32], index: 0, kind: input, shape index: {}]   ;;  %s244_s1 = inlined_call_operand.vmem [shape: f32[1,4], index: 1, kind: input, shape index: {}]   ;;  %s245_s2 = inlined_call_operand.hbm [shape: f32[16,32], index: 2, kind: input, shape index: {}]   ;;  %s246_s3 = inlined_call_operand.vmem [shape: f32[16,4], index: 3, kind: output, shape index: {}]  }
   0x1   :  { %9 = vsyncpa [#allocation5], 0  ;;  %s204_s12 = smov [#allocation2]   ;;  %s205_s14 = smov [#allocation4]  }
   0x2   :  { %s16_s13 = sshll.u32 %s204_s12, 4  ;;  %s27_s15 = sshll.u32 %s205_s14, 4  ;;  %s17_s13 = int_to_ptr.vmem [resolvable:$true] %s16_s13  ;;  %s28_s15 = int_to_ptr.vmem [resolvable:$true] %s27_s15 }
   0x3   :  { %s168_s16 = scalar_lea.vmem %s17_s13, 64  ;;  %p173_p1 = scmp.lt.s32.totalorder %s17_s13, %s17_s13 }
   0x4   :  { %p169_p0 = scmp.ne.s32.totalorder %s17_s13, %s168_s16  ;;  %p174_p2 = scmp.lt.s32.totalorder %s168_s16, %s168_s16 }
   0x6   :  { %p175_p3 = por %p174_p2, %p173_p1 }
   0x8   :  { %p176_p4 = pnand %p175_p3, %p169_p0 }
   0xa   :  { %179 = shalt.err (!%p176_p4)
}
   0xb   :  { %19 = dma.hbm_to_vmem [thread:$0]  %s243_s0, 64, %s17_s13, [#allocation3]  }
   0xc   :  { %s188_s19 = scalar_lea.vmem %s28_s15, 256  ;;  %p193_p6 = scmp.lt.s32.totalorder %s28_s15, %s28_s15 }
   0xd   :  { %p189_p5 = scmp.ne.s32.totalorder %s28_s15, %s188_s19  ;;  %p194_p7 = scmp.lt.s32.totalorder %s188_s19, %s188_s19 }
   0xf   :  { %p195_p8 = por %p194_p7, %p193_p6 }
  0x11   :  { %p196_p9 = pnand %p195_p8, %p189_p5 }
  0x13   :  { %199 = shalt.err (!%p196_p9)
}
  0x14   :  { %s206_s20 = smov 128   ;;  %s207_s21 = smov 8  }
  0x15   :  { %33 = dma.hbm_to_vmem [thread:$0]  %s245_s2, 256, %s28_s15, [#allocation5], %s206_s20, %s206_s20, %s207_s21  }
  0x16   :  { %200 = dma.done.wait [#allocation3], 64  }
  0x17   :  { %201 = vsyncadd [#allocation3], 4294967232 }
  0x18   :  { %202 = dma.done.wait [#allocation5], 256  }
  0x19   :  { %203 = vsyncadd [#allocation5], 4294967040  ;;  %vm50_vm0 = vcmask 261120   ;;  %v42_v0 = vld [vmem:[#allocation2] sm:$0xf]  ;;  %v40_v1 = vld [vmem:[#allocation4] sm:$0xff] }
  0x1a   :  { %151 = vmatprep.subr.msk.mxu0 %vm50_vm0, %v42_v0  ;;  %153 = vmatprep.mubr.msk.f32.mxu0 %vm50_vm0, %v40_v1  ;;  %v41_v2 = vld [vmem:[#allocation4 + $0x8] sm:$0xff]  ;;  %v144_v3 = vld [vmem:[%s244_s1] ss:$0 sm:$0xff]  ;;  %vm135_vm1 = vcmask 31744  }
  0x1b   :  { %152 = vmatpush3.xpose.msk.msra.mxu0 %vm50_vm0, %v42_v0 }
  0x1e   :  { %154 = vmatmul.mubr.msk.f32.vlgmr.msra.gmra.mxu0 %vm50_vm0, %v41_v2 }
  0xde   :  { %v155_v4 = vpop.f32.mrf.mxu0 }
  0xdf   :  { %v132_v5 = vadd.f32 %v155_v4, %v144_v3 }
  0xe0   :  { %v126_v6 = vpop.f32.mrf.mxu0 }
  0xe1   :  { %137 = vst.msk [vmem:[%s246_s3 + $0x8] sm:$0xff] %vm135_vm1, %v132_v5  ;;  %v127_v7 = vadd.f32 %v144_v3, %v126_v6 }
  0xe3   :  { %136 = vst.msk [vmem:[%s246_s3] sm:$0xff] %vm135_vm1, %v127_v7 }
  0xe4   :  { %142 = vsyncpa [#allocation3], 1 }
  0xe5   :  { %143 = vsyncpa [#allocation5], 1 }

</bundles_post_ra>
